<compile_context>
chip_gen: v6e
topology: v6e:2x2x1
jax: 0.10.0
libtpu: 0.0.40
codegen_flags: <defaults>
</compile_context>

<pallas_src>
import functools

import numpy as np

import jax
import jax.numpy as jnp
from jax.experimental import pallas as pl
from jax.experimental.pallas import tpu as pltpu


# ----------------------------------------------------------------------------
# Host-side weight packing: block-Toeplitz slabs (one per vertical tap dy).
# Lane layout everywhere is  (spatial column) * channels + channel.
# ----------------------------------------------------------------------------
def _toeplitz_conv1(w1, width):
    """w1: (3,3,Cin,Chid) -> (3, (W+2)*Cin, W*Chid).  Input is width-padded by 1."""
    w1 = np.asarray(w1, np.float32)
    _, _, cin, chid = w1.shape
    t = np.zeros((3, (width + 2) * cin, width * chid), np.float32)
    for dy in range(3):
        for u in range(width):            # hidden (output-of-conv1) column
            for dx in range(3):
                jx = u + dx               # padded-input column index
                t[dy, jx * cin:(jx + 1) * cin, u * chid:(u + 1) * chid] = w1[dy, dx]
    return t


def _toeplitz_conv2(w2, width):
    """w2: (3,3,Chid,Cout) -> (3, W*Chid, W*Cout).  Zero-padding baked in."""
    w2 = np.asarray(w2, np.float32)
    _, _, chid, cout = w2.shape
    t = np.zeros((3, width * chid, width * cout), np.float32)
    for dy in range(3):
        for ow in range(width):           # output column
            for dx in range(3):
                u = ow + dx - 1           # hidden column (skip if outside image)
                if 0 <= u < width:
                    t[dy, u * chid:(u + 1) * chid, ow * cout:(ow + 1) * cout] = w2[dy, dx]
    return t


# ----------------------------------------------------------------------------
# Fused kernel: relu(conv3x3)+bias, conv3x3+bias, residual add.
# ----------------------------------------------------------------------------
def _make_kernel(TH, W, Cin, Chid, Cout, nt):
    K1 = (W + 2) * Cin            # padded-input lanes per row
    N1 = W * Chid                 # hidden lanes per row
    N2 = W * Cout                 # output lanes per row
    Hh = TH + 2                   # hidden rows per tile (1-row ring top/bottom)

    def kernel(xp_ref, xc_ref, xn_ref, t1_ref, b1_ref, t2_ref, b2_ref,
               o_ref, xs_ref, hs_ref):
        t = pl.program_id(1)

        # ---- assemble input rows [r0-2, r0+TH+2) into the f32 scratch -------
        xc = xc_ref[0].astype(jnp.float32)                      # (TH, K1)
        top = xp_ref[0, TH - 2:TH, :].astype(jnp.float32)       # rows r0-2, r0-1
        bot = xn_ref[0, 0:2, :].astype(jnp.float32)             # rows r0+TH, +TH+1
        zero2 = jnp.zeros_like(top)
        top = jnp.where(t > 0, top, zero2)                      # true top border
        bot = jnp.where(t < nt - 1, bot, zero2)                 # true bottom border
        xs_ref[0:2, :] = top
        xs_ref[2:2 + TH, :] = xc
        xs_ref[2 + TH:4 + TH, :] = bot

        # ---- conv1 + bias + relu: 3 block-Toeplitz matmuls (dy taps) --------
        acc1 = jnp.zeros((Hh, N1), jnp.float32) + b1_ref[...]
        for dy in range(3):
            lhs = xs_ref[dy:dy + Hh, :].astype(jnp.bfloat16)    # (Hh, K1)
            acc1 = acc1 + jnp.dot(lhs, t1_ref[dy],
                                  preferred_element_type=jnp.float32)
        h = jnp.maximum(acc1, 0.0)

        # Zero hidden rows that lie OUTSIDE the true image (conv2 zero padding).
        row = jax.lax.broadcasted_iota(jnp.int32, (Hh, 1), 0)
        valid = ((row >= 1) | (t > 0)) & ((row <= TH) | (t < nt - 1))
        hs_ref[...] = jnp.where(valid, h, 0.0)

        # ---- conv2 + bias + residual skip -----------------------------------
        acc2 = jnp.zeros((TH, N2), jnp.float32) + b2_ref[...]
        for dy in range(3):
            lhs = hs_ref[dy:dy + TH, :].astype(jnp.bfloat16)    # (TH, N1)
            acc2 = acc2 + jnp.dot(lhs, t2_ref[dy],
                                  preferred_element_type=jnp.float32)

        res = xc_ref[0, :, Cin:Cin + N2].astype(jnp.float32)    # un-padded columns
        o_ref[0] = (acc2 + res).astype(o_ref.dtype)

    return kernel


def _pick_row_tile(height, row_tile):
    if row_tile is not None:
        row_tile = int(row_tile)
        if row_tile < 2 or row_tile % 2 or height % row_tile:
            raise ValueError(f"row_tile={row_tile} must be even, >=2 and divide H={height}")
        return row_tile
    for th in range(min(height, 32), 1, -1):   # small images: whole image per step
        if height % th == 0 and th % 2 == 0:
            return th
    return height


def fused_residual_cnn(x_nhwc, t1, b1t, t2, b2t, *, row_tile=None):
    """y = conv3x3(relu(conv3x3(x,W1)+b1), W2) + b2 + x   as a single pallas_call."""
    B, H, W, Cin = x_nhwc.shape
    Chid = b1t.shape[1] // W
    Cout = b2t.shape[1] // W
    TH = _pick_row_tile(H, row_tile)
    nt = H // TH
    K1 = (W + 2) * Cin
    N1 = W * Chid
    N2 = W * Cout

    # bf16 activations, width zero-padded by 1 (channels folded into lanes).
    xb = jnp.pad(x_nhwc.astype(jnp.bfloat16), ((0, 0), (0, 0), (1, 1), (0, 0)))
    x2d = xb.reshape(B, H, K1)

    kernel = _make_kernel(TH, W, Cin, Chid, Cout, nt)

    def xspec(imap):
        return pl.BlockSpec((1, TH, K1), imap)

    out = pl.pallas_call(
        kernel,
        out_shape=jax.ShapeDtypeStruct((B, H, N2), jnp.float32),
        grid=(B, nt),
        in_specs=[
            xspec(lambda b, t: (b, jnp.maximum(t - 1, 0), 0)),        # prev block
            xspec(lambda b, t: (b, t, 0)),                            # centre block
            xspec(lambda b, t: (b, jnp.minimum(t + 1, nt - 1), 0)),   # next block
            pl.BlockSpec((3, K1, N1), lambda b, t: (0, 0, 0)),        # T1 (resident)
            pl.BlockSpec((1, N1), lambda b, t: (0, 0)),               # b1 (tiled)
            pl.BlockSpec((3, N1, N2), lambda b, t: (0, 0, 0)),        # T2 (resident)
            pl.BlockSpec((1, N2), lambda b, t: (0, 0)),               # b2 (tiled)
        ],
        out_specs=pl.BlockSpec((1, TH, N2), lambda b, t: (b, t, 0)),
        scratch_shapes=[
            pltpu.VMEM((TH + 4, K1), jnp.float32),    # haloed input tile
            pltpu.VMEM((TH + 2, N1), jnp.float32),    # hidden activation (never in HBM)
        ],
        compiler_params=pltpu.CompilerParams(
            dimension_semantics=("parallel", "parallel"),
        ),
    )(x2d, x2d, x2d, t1, b1t, t2, b2t)

    return out.reshape(B, H, W, Cout)


@functools.partial(jax.jit, static_argnames=("row_tile",))
def _forward_impl(x_nchw, t1, b1t, t2, b2t, row_tile=None):
    x = jnp.transpose(x_nchw, (0, 2, 3, 1))                 # NCHW -> NHWC
    y = fused_residual_cnn(x, t1, b1t, t2, b2t, row_tile=row_tile)
    return jnp.transpose(y, (0, 3, 1, 2))                   # back to NCHW


class PallasModel:
    """JAX/Pallas equivalent of Model (mode='train'): forward(x) = inner CNN(x)."""

    def __init__(self, channels=4, hidden=32, seed=0):
        k1, k2, k3, k4 = jax.random.split(jax.random.PRNGKey(seed), 4)
        # Deterministic synthetic weights (no checkpoint loading).
        self.w1 = (jax.random.normal(k1, (3, 3, channels, hidden), jnp.float32)
                   * (1.0 / (9.0 * channels) ** 0.5))
        self.b1 = jax.random.normal(k2, (hidden,), jnp.float32) * 0.01
        self.w2 = (jax.random.normal(k3, (3, 3, hidden, channels), jnp.float32)
                   * (1.0 / (9.0 * hidden) ** 0.5))
        self.b2 = jax.random.normal(k4, (channels,), jnp.float32) * 0.01
        self._packed = {}        # width -> (T1, b1_tiled, T2, b2_tiled)

    def _pack(self, width):
        if width not in self._packed:
            t1 = jnp.asarray(_toeplitz_conv1(self.w1, width)).astype(jnp.bfloat16)
            t2 = jnp.asarray(_toeplitz_conv2(self.w2, width)).astype(jnp.bfloat16)
            b1t = jnp.tile(self.b1, (width,)).reshape(1, -1).astype(jnp.float32)
            b2t = jnp.tile(self.b2, (width,)).reshape(1, -1).astype(jnp.float32)
            self._packed[width] = (t1, b1t, t2, b2t)
        return self._packed[width]

    def forward(self, x_nchw, row_tile=None):
        t1, b1t, t2, b2t = self._pack(x_nchw.shape[-1])
        return _forward_impl(x_nchw, t1, b1t, t2, b2t, row_tile=row_tile)


def _reference_forward(model, x_nchw):
    """Pure-JAX reference (lax.conv, same bf16-in / f32-accumulate recipe)."""
    xb = x_nchw.astype(jnp.bfloat16)

    def conv(inp, w_hwio):
        return jax.lax.conv_general_dilated(
            inp, w_hwio.astype(jnp.bfloat16), window_strides=(1, 1), padding="SAME",
            dimension_numbers=("NCHW", "HWIO", "NCHW"),
            preferred_element_type=jnp.float32)

    h = jnp.maximum(conv(xb, model.w1) + model.b1[None, :, None, None], 0.0)
    y = conv(h.astype(jnp.bfloat16), model.w2) + model.b2[None, :, None, None]
    return y + xb.astype(jnp.float32)


if __name__ == "__main__":
    B, C, H, W = 2, 4, 16, 16
    x = jax.random.normal(jax.random.PRNGKey(0), (B, C, H, W), jnp.float32)  # NCHW

    model = PallasModel(channels=C, hidden=32, seed=0)
    y_ref = _reference_forward(model, x)

    # Multi-row-tile path (exercises cross-tile halo exchange): 2 tiles of 8 rows.
    y_tiled = jax.block_until_ready(model.forward(x, row_tile=8))
    assert y_tiled.shape == (B, C, H, W), y_tiled.shape
    err_tiled = float(jnp.max(jnp.abs(y_tiled - y_ref)))
    assert err_tiled < 1e-2, f"tiled max abs err {err_tiled}"

    # Default tile choice (single 16-row tile; both halos are image borders).
    y_def = jax.block_until_ready(model.forward(x))
    err_def = float(jnp.max(jnp.abs(y_def - y_ref)))
    assert err_def < 1e-2, f"default max abs err {err_def}"

    print("KERNEL_OK")
</pallas_src>

<mosaic_0001>
module attributes {stable_mosaic.version = 11 : i64} {
  func.func @kernel(%arg0: i32, %arg1: i32, %arg2: memref<1x8x72xbf16, #tpu.memory_space<vmem>>, %arg3: memref<1x8x72xbf16, #tpu.memory_space<vmem>>, %arg4: memref<1x8x72xbf16, #tpu.memory_space<vmem>>, %arg5: memref<3x72x512xbf16, #tpu.memory_space<vmem>>, %arg6: memref<1x512xf32, #tpu.memory_space<vmem>>, %arg7: memref<3x512x64xbf16, #tpu.memory_space<vmem>>, %arg8: memref<1x64xf32, #tpu.memory_space<vmem>>, %arg9: memref<1x8x64xf32, #tpu.memory_space<vmem>>, %arg10: memref<12x72xf32, #tpu.memory_space<vmem>>, %arg11: memref<10x512xf32, #tpu.memory_space<vmem>>) attributes {dimension_semantics = [#tpu.dimension_semantics<parallel>, #tpu.dimension_semantics<parallel>], iteration_bounds = array<i64: 2, 2>, scalar_prefetch = 0 : i64, scratch_operands = 2 : i64, tpu.core_type = #tpu.core_type<tc>, window_params = [{transform_indices = @transform_0, window_bounds = array<i64: 1, 8, 72>}, {transform_indices = @transform_1, window_bounds = array<i64: 1, 8, 72>}, {transform_indices = @transform_2, window_bounds = array<i64: 1, 8, 72>}, {pipeline_mode = #tpu.pipeline_mode<synchronous>, transform_indices = @transform_3, window_bounds = array<i64: 3, 72, 512>}, {pipeline_mode = #tpu.pipeline_mode<synchronous>, transform_indices = @transform_4, window_bounds = array<i64: 1, 512>}, {pipeline_mode = #tpu.pipeline_mode<synchronous>, transform_indices = @transform_5, window_bounds = array<i64: 3, 512, 64>}, {pipeline_mode = #tpu.pipeline_mode<synchronous>, transform_indices = @transform_6, window_bounds = array<i64: 1, 64>}, {transform_indices = @transform_7, window_bounds = array<i64: 1, 8, 64>}]} {
    %c0 = arith.constant 0 : index
    %c0_0 = arith.constant 0 : index
    %c0_1 = arith.constant 0 : index
    %0 = vector.load %arg3[%c0, %c0_0, %c0_1] : memref<1x8x72xbf16, #tpu.memory_space<vmem>>, vector<1x8x72xbf16>
    %1 = vector.shape_cast %0 : vector<1x8x72xbf16> to vector<8x72xbf16>
    %2 = arith.extf %1 : vector<8x72xbf16> to vector<8x72xf32>
    %c0_2 = arith.constant 0 : index
    %c6 = arith.constant 6 : index
    %c0_3 = arith.constant 0 : index
    %3 = vector.load %arg2[%c0_2, %c6, %c0_3] : memref<1x8x72xbf16, #tpu.memory_space<vmem>>, vector<1x2x72xbf16>
    %4 = vector.shape_cast %3 : vector<1x2x72xbf16> to vector<2x72xbf16>
    %5 = arith.extf %4 : vector<2x72xbf16> to vector<2x72xf32>
    %c0_4 = arith.constant 0 : index
    %c0_5 = arith.constant 0 : index
    %c0_6 = arith.constant 0 : index
    %6 = vector.load %arg4[%c0_4, %c0_5, %c0_6] : memref<1x8x72xbf16, #tpu.memory_space<vmem>>, vector<1x2x72xbf16>
    %7 = vector.shape_cast %6 : vector<1x2x72xbf16> to vector<2x72xbf16>
    %8 = arith.extf %7 : vector<2x72xbf16> to vector<2x72xf32>
    %cst = arith.constant 0.000000e+00 : f32
    %9 = vector.broadcast %cst : f32 to vector<2x72xf32>
    %c0_i32 = arith.constant 0 : i32
    %10 = arith.cmpi sgt, %arg1, %c0_i32 : i32
    %11 = arith.select %10, %5, %9 : vector<2x72xf32>
    %c1_i32 = arith.constant 1 : i32
    %12 = arith.cmpi slt, %arg1, %c1_i32 : i32
    %13 = arith.select %12, %8, %9 : vector<2x72xf32>
    %c0_7 = arith.constant 0 : index
    %c0_8 = arith.constant 0 : index
    %14 = vector.load %arg10[%c0_7, %c0_8] : memref<12x72xf32, #tpu.memory_space<vmem>>, vector<2x72xf32>
    tpu.vector_store %arg10[%c0_7, %c0_8], %11 {strides = array<i32>} : memref<12x72xf32, #tpu.memory_space<vmem>>, vector<2x72xf32>,
    %c2 = arith.constant 2 : index
    %c0_9 = arith.constant 0 : index
    %15 = vector.load %arg10[%c2, %c0_9] : memref<12x72xf32, #tpu.memory_space<vmem>>, vector<8x72xf32>
    tpu.vector_store %arg10[%c2, %c0_9], %2 {strides = array<i32>} : memref<12x72xf32, #tpu.memory_space<vmem>>, vector<8x72xf32>,
    %c10 = arith.constant 10 : index
    %c0_10 = arith.constant 0 : index
    %16 = vector.load %arg10[%c10, %c0_10] : memref<12x72xf32, #tpu.memory_space<vmem>>, vector<2x72xf32>
    tpu.vector_store %arg10[%c10, %c0_10], %13 {strides = array<i32>} : memref<12x72xf32, #tpu.memory_space<vmem>>, vector<2x72xf32>,
    %cst_11 = arith.constant 0.000000e+00 : f32
    %17 = vector.broadcast %cst_11 : f32 to vector<10x512xf32>
    %c0_12 = arith.constant 0 : index
    %c0_13 = arith.constant 0 : index
    %18 = vector.load %arg6[%c0_12, %c0_13] : memref<1x512xf32, #tpu.memory_space<vmem>>, vector<1x512xf32>
    %19 = vector.broadcast %18 : vector<1x512xf32> to vector<10x512xf32>
    %20 = arith.addf %17, %19 : vector<10x512xf32>
    %c0_14 = arith.constant 0 : index
    %c0_15 = arith.constant 0 : index
    %21 = vector.load %arg10[%c0_14, %c0_15] : memref<12x72xf32, #tpu.memory_space<vmem>>, vector<10x72xf32>
    %22 = arith.truncf %21 : vector<10x72xf32> to vector<10x72xbf16>
    %c0_16 = arith.constant 0 : index
    %c0_17 = arith.constant 0 : index
    %c0_18 = arith.constant 0 : index
    %23 = vector.load %arg5[%c0_16, %c0_17, %c0_18] : memref<3x72x512xbf16, #tpu.memory_space<vmem>>, vector<1x72x512xbf16>
    %24 = vector.shape_cast %23 : vector<1x72x512xbf16> to vector<72x512xbf16>
    %cst_19 = arith.constant dense<0.000000e+00> : vector<10x512xf32>
    %25 = tpu.matmul %22, %24, %cst_19 {dimension_numbers = #tpu.dot_dimension_numbers<[1], [0], [0], [1], [0, 0, 1, 1], [], []>} : vector<10x72xbf16>, vector<72x512xbf16>, vector<10x512xf32> -> vector<10x512xf32>
    %26 = arith.addf %20, %25 : vector<10x512xf32>
    %c1 = arith.constant 1 : index
    %c0_20 = arith.constant 0 : index
    %27 = vector.load %arg10[%c1, %c0_20] : memref<12x72xf32, #tpu.memory_space<vmem>>, vector<10x72xf32>
    %28 = arith.truncf %27 : vector<10x72xf32> to vector<10x72xbf16>
    %c1_21 = arith.constant 1 : index
    %c0_22 = arith.constant 0 : index
    %c0_23 = arith.constant 0 : index
    %29 = vector.load %arg5[%c1_21, %c0_22, %c0_23] : memref<3x72x512xbf16, #tpu.memory_space<vmem>>, vector<1x72x512xbf16>
    %30 = vector.shape_cast %29 : vector<1x72x512xbf16> to vector<72x512xbf16>
    %cst_24 = arith.constant dense<0.000000e+00> : vector<10x512xf32>
    %31 = tpu.matmul %28, %30, %cst_24 {dimension_numbers = #tpu.dot_dimension_numbers<[1], [0], [0], [1], [0, 0, 1, 1], [], []>} : vector<10x72xbf16>, vector<72x512xbf16>, vector<10x512xf32> -> vector<10x512xf32>
    %32 = arith.addf %26, %31 : vector<10x512xf32>
    %c2_25 = arith.constant 2 : index
    %c0_26 = arith.constant 0 : index
    %33 = vector.load %arg10[%c2_25, %c0_26] : memref<12x72xf32, #tpu.memory_space<vmem>>, vector<10x72xf32>
    %34 = arith.truncf %33 : vector<10x72xf32> to vector<10x72xbf16>
    %c2_27 = arith.constant 2 : index
    %c0_28 = arith.constant 0 : index
    %c0_29 = arith.constant 0 : index
    %35 = vector.load %arg5[%c2_27, %c0_28, %c0_29] : memref<3x72x512xbf16, #tpu.memory_space<vmem>>, vector<1x72x512xbf16>
    %36 = vector.shape_cast %35 : vector<1x72x512xbf16> to vector<72x512xbf16>
    %cst_30 = arith.constant dense<0.000000e+00> : vector<10x512xf32>
    %37 = tpu.matmul %34, %36, %cst_30 {dimension_numbers = #tpu.dot_dimension_numbers<[1], [0], [0], [1], [0, 0, 1, 1], [], []>} : vector<10x72xbf16>, vector<72x512xbf16>, vector<10x512xf32> -> vector<10x512xf32>
    %38 = arith.addf %32, %37 : vector<10x512xf32>
    %cst_31 = arith.constant 0.000000e+00 : f32
    %39 = vector.broadcast %cst_31 : f32 to vector<10x512xf32>
    %40 = arith.maximumf %38, %39 : vector<10x512xf32>
    %41 = tpu.iota {dimensions = array<i32: 0>} : vector<10x1xi32>
    %c1_i32_32 = arith.constant 1 : i32
    %42 = vector.broadcast %c1_i32_32 : i32 to vector<10x1xi32>
    %43 = arith.cmpi sge, %41, %42 : vector<10x1xi32>
    %c0_i32_33 = arith.constant 0 : i32
    %44 = arith.cmpi sgt, %arg1, %c0_i32_33 : i32
    %45 = vector.broadcast %44 : i1 to vector<10x1xi1>
    %46 = arith.ori %43, %45 : vector<10x1xi1>
    %c8_i32 = arith.constant 8 : i32
    %47 = vector.broadcast %c8_i32 : i32 to vector<10x1xi32>
    %48 = arith.cmpi sle, %41, %47 : vector<10x1xi32>
    %c1_i32_34 = arith.constant 1 : i32
    %49 = arith.cmpi slt, %arg1, %c1_i32_34 : i32
    %50 = vector.broadcast %49 : i1 to vector<10x1xi1>
    %51 = arith.ori %48, %50 : vector<10x1xi1>
    %52 = arith.andi %46, %51 : vector<10x1xi1>
    %cst_35 = arith.constant 0.000000e+00 : f32
    %53 = vector.shape_cast %52 : vector<10x1xi1> to vector<10x1xi1>
    %54 = vector.broadcast %53 : vector<10x1xi1> to vector<10x512xi1>
    %55 = vector.broadcast %cst_35 : f32 to vector<10x512xf32>
    %56 = arith.select %54, %40, %55 : vector<10x512xi1>, vector<10x512xf32>
    %c0_36 = arith.constant 0 : index
    %c0_37 = arith.constant 0 : index
    %57 = vector.load %arg11[%c0_36, %c0_37] : memref<10x512xf32, #tpu.memory_space<vmem>>, vector<10x512xf32>
    tpu.vector_store %arg11[%c0_36, %c0_37], %56 {strides = array<i32>} : memref<10x512xf32, #tpu.memory_space<vmem>>, vector<10x512xf32>,
    %cst_38 = arith.constant 0.000000e+00 : f32
    %58 = vector.broadcast %cst_38 : f32 to vector<8x64xf32>
    %c0_39 = arith.constant 0 : index
    %c0_40 = arith.constant 0 : index
    %59 = vector.load %arg8[%c0_39, %c0_40] : memref<1x64xf32, #tpu.memory_space<vmem>>, vector<1x64xf32>
    %60 = vector.broadcast %59 : vector<1x64xf32> to vector<8x64xf32>
    %61 = arith.addf %58, %60 : vector<8x64xf32>
    %c0_41 = arith.constant 0 : index
    %c0_42 = arith.constant 0 : index
    %62 = vector.load %arg11[%c0_41, %c0_42] : memref<10x512xf32, #tpu.memory_space<vmem>>, vector<8x512xf32>
    %63 = arith.truncf %62 : vector<8x512xf32> to vector<8x512xbf16>
    %c0_43 = arith.constant 0 : index
    %c0_44 = arith.constant 0 : index
    %c0_45 = arith.constant 0 : index
    %64 = vector.load %arg7[%c0_43, %c0_44, %c0_45] : memref<3x512x64xbf16, #tpu.memory_space<vmem>>, vector<1x512x64xbf16>
    %65 = vector.shape_cast %64 : vector<1x512x64xbf16> to vector<512x64xbf16>
    %cst_46 = arith.constant dense<0.000000e+00> : vector<8x64xf32>
    %66 = tpu.matmul %63, %65, %cst_46 {dimension_numbers = #tpu.dot_dimension_numbers<[1], [0], [0], [1], [0, 0, 1, 1], [], []>} : vector<8x512xbf16>, vector<512x64xbf16>, vector<8x64xf32> -> vector<8x64xf32>
    %67 = arith.addf %61, %66 : vector<8x64xf32>
    %c1_47 = arith.constant 1 : index
    %c0_48 = arith.constant 0 : index
    %68 = vector.load %arg11[%c1_47, %c0_48] : memref<10x512xf32, #tpu.memory_space<vmem>>, vector<8x512xf32>
    %69 = arith.truncf %68 : vector<8x512xf32> to vector<8x512xbf16>
    %c1_49 = arith.constant 1 : index
    %c0_50 = arith.constant 0 : index
    %c0_51 = arith.constant 0 : index
    %70 = vector.load %arg7[%c1_49, %c0_50, %c0_51] : memref<3x512x64xbf16, #tpu.memory_space<vmem>>, vector<1x512x64xbf16>
    %71 = vector.shape_cast %70 : vector<1x512x64xbf16> to vector<512x64xbf16>
    %cst_52 = arith.constant dense<0.000000e+00> : vector<8x64xf32>
    %72 = tpu.matmul %69, %71, %cst_52 {dimension_numbers = #tpu.dot_dimension_numbers<[1], [0], [0], [1], [0, 0, 1, 1], [], []>} : vector<8x512xbf16>, vector<512x64xbf16>, vector<8x64xf32> -> vector<8x64xf32>
    %73 = arith.addf %67, %72 : vector<8x64xf32>
    %c2_53 = arith.constant 2 : index
    %c0_54 = arith.constant 0 : index
    %74 = vector.load %arg11[%c2_53, %c0_54] : memref<10x512xf32, #tpu.memory_space<vmem>>, vector<8x512xf32>
    %75 = arith.truncf %74 : vector<8x512xf32> to vector<8x512xbf16>
    %c2_55 = arith.constant 2 : index
    %c0_56 = arith.constant 0 : index
    %c0_57 = arith.constant 0 : index
    %76 = vector.load %arg7[%c2_55, %c0_56, %c0_57] : memref<3x512x64xbf16, #tpu.memory_space<vmem>>, vector<1x512x64xbf16>
    %77 = vector.shape_cast %76 : vector<1x512x64xbf16> to vector<512x64xbf16>
    %cst_58 = arith.constant dense<0.000000e+00> : vector<8x64xf32>
    %78 = tpu.matmul %75, %77, %cst_58 {dimension_numbers = #tpu.dot_dimension_numbers<[1], [0], [0], [1], [0, 0, 1, 1], [], []>} : vector<8x512xbf16>, vector<512x64xbf16>, vector<8x64xf32> -> vector<8x64xf32>
    %79 = arith.addf %73, %78 : vector<8x64xf32>
    %c0_59 = arith.constant 0 : index
    %c0_60 = arith.constant 0 : index
    %c4 = arith.constant 4 : index
    %80 = vector.load %arg3[%c0_59, %c0_60, %c4] : memref<1x8x72xbf16, #tpu.memory_space<vmem>>, vector<1x8x64xbf16>
    %81 = vector.shape_cast %80 : vector<1x8x64xbf16> to vector<8x64xbf16>
    %82 = arith.extf %81 : vector<8x64xbf16> to vector<8x64xf32>
    %83 = arith.addf %79, %82 : vector<8x64xf32>
    %c0_61 = arith.constant 0 : index
    %c0_62 = arith.constant 0 : index
    %c0_63 = arith.constant 0 : index
    %84 = vector.load %arg9[%c0_61, %c0_62, %c0_63] : memref<1x8x64xf32, #tpu.memory_space<vmem>>, vector<1x8x64xf32>
    %85 = vector.shape_cast %84 : vector<1x8x64xf32> to vector<8x64xf32>
    %86 = vector.shape_cast %83 : vector<8x64xf32> to vector<1x8x64xf32>
    tpu.vector_store %arg9[%c0_61, %c0_62, %c0_63], %86 {strides = array<i32>} : memref<1x8x64xf32, #tpu.memory_space<vmem>>, vector<1x8x64xf32>,
    return
  }
  func.func @transform_0(%arg0: i32, %arg1: i32) -> (i32, i32, i32) {
    %c1_i32 = arith.constant 1 : i32
    %0 = arith.subi %arg1, %c1_i32 : i32
    %c0_i32 = arith.constant 0 : i32
    %1 = arith.maxsi %0, %c0_i32 : i32
    %c0_i32_0 = arith.constant 0 : i32
    %c0_i32_1 = arith.constant 0 : i32
    return %arg0, %1, %c0_i32_0 : i32, i32, i32
  }
  func.func @transform_1(%arg0: i32, %arg1: i32) -> (i32, i32, i32) {
    %c0_i32 = arith.constant 0 : i32
    %c0_i32_0 = arith.constant 0 : i32
    return %arg0, %arg1, %c0_i32 : i32, i32, i32
  }
  func.func @transform_2(%arg0: i32, %arg1: i32) -> (i32, i32, i32) {
    %c1_i32 = arith.constant 1 : i32
    %0 = arith.addi %arg1, %c1_i32 : i32
    %c1_i32_0 = arith.constant 1 : i32
    %1 = arith.minsi %0, %c1_i32_0 : i32
    %c0_i32 = arith.constant 0 : i32
    %c0_i32_1 = arith.constant 0 : i32
    return %arg0, %1, %c0_i32 : i32, i32, i32
  }
  func.func @transform_3(%arg0: i32, %arg1: i32) -> (i32, i32, i32) {
    %c0_i32 = arith.constant 0 : i32
    %c0_i32_0 = arith.constant 0 : i32
    %c0_i32_1 = arith.constant 0 : i32
    %c0_i32_2 = arith.constant 0 : i32
    return %c0_i32, %c0_i32_0, %c0_i32_1 : i32, i32, i32
  }
  func.func @transform_4(%arg0: i32, %arg1: i32) -> (i32, i32) {
    %c0_i32 = arith.constant 0 : i32
    %c0_i32_0 = arith.constant 0 : i32
    %c0_i32_1 = arith.constant 0 : i32
    return %c0_i32, %c0_i32_0 : i32, i32
  }
  func.func @transform_5(%arg0: i32, %arg1: i32) -> (i32, i32, i32) {
    %c0_i32 = arith.constant 0 : i32
    %c0_i32_0 = arith.constant 0 : i32
    %c0_i32_1 = arith.constant 0 : i32
    %c0_i32_2 = arith.constant 0 : i32
    return %c0_i32, %c0_i32_0, %c0_i32_1 : i32, i32, i32
  }
  func.func @transform_6(%arg0: i32, %arg1: i32) -> (i32, i32) {
    %c0_i32 = arith.constant 0 : i32
    %c0_i32_0 = arith.constant 0 : i32
    %c0_i32_1 = arith.constant 0 : i32
    return %c0_i32, %c0_i32_0 : i32, i32
  }
  func.func @transform_7(%arg0: i32, %arg1: i32) -> (i32, i32, i32) {
    %c0_i32 = arith.constant 0 : i32
    %c0_i32_0 = arith.constant 0 : i32
    return %arg0, %arg1, %c0_i32 : i32, i32, i32
  }
}

</mosaic_0001>

<bundles_post_ra>
// kernel: _forward_impl.1
= control target key start
LH: loop header
LB: loop body
LE: loop exit
PB: predicated region body
PF: predicated region fallthrough
CT: control target
= control target key end

     0   :  { %s3202_s24 = smov 0   ;;  %s3204_s25 = smov 0   ;;  %s3825_s0 = inlined_call_operand.vmem [shape: bf16[2,16,72], index: 0, kind: input, shape index: {}, may-alias: {0,1,2}]   ;;  %s3826_s1 = inlined_call_operand.vmem [shape: bf16[2,16,72], index: 1, kind: input, shape index: {}, may-alias: {0,1,2}]   ;;  %s3827_s2 = inlined_call_operand.vmem [shape: bf16[2,16,72], index: 2, kind: input, shape index: {}, may-alias: {0,1,2}]   ;;  %s3828_s3 = inlined_call_operand.vmem [shape: bf16[3,72,512], index: 3, kind: input, shape index: {}]   ;;  %s3829_s4 = inlined_call_operand.vmem [shape: f32[1,512], index: 4, kind: input, shape index: {}]   ;;  %s3830_s5 = inlined_call_operand.vmem [shape: bf16[3,512,64], index: 5, kind: input, shape index: {}]   ;;  %s3831_s6 = inlined_call_operand.vmem [shape: f32[1,64], index: 6, kind: input, shape index: {}]   ;;  %s3832_s7 = inlined_call_operand.vmem [shape: f32[2,16,64], index: 7, kind: output, shape index: {}]  }
   0x1   :  { %s3206_s26 = smov 0   ;;  %s3208_s27 = smov 0  }
   0x2   :  { %s3210_s28 = smov 0  }
   0x3 LB: > { %s26_s29 = sadd.s32 1, %s3150_s26  ;;  %s29_s30 = sadd.s32 1, %s3154_s27  ;;  %s3158_s28 = sphi %s3210_s28, %s17_s28   ;;  %s3154_s27 = sphi %s3208_s27, %s3845_s27   ;;  %s3150_s26 = sphi %s3206_s26, %s3844_s26   ;;  %s3146_s25 = sphi %s3204_s25, %s3843_s25   ;;  %s3142_s24 = sphi %s3202_s24, %s3842_s24  }
   0x4   : > { %p27_p0 = scmp.ge.s32.totalorder %s26_s29, 2  ;;  %p2401_p1 = scmp.ge.s32.totalorder %s3158_s28, 1 }
   0x5   : > { %p310_p2 = scmp.lt.s32.totalorder %s3158_s28, 5 }
   0x6   : > { %s3847_s29 = smov (%p27_p0, %s26_s29), 0  ;;  %s3849_s30 = smov (!%p27_p0, %s29_s30), %s3154_s27 }
   0x7   : > { %p311_p3 = pnand %p2401_p1, %p310_p2  ;;  %p31_p4 = scmp.ge.s32.totalorder %s3849_s30, 2 }
   0x8   : > { %s2402_s12 = sadd.s32 (!%p311_p3), 4294967295, %s3142_s24  ;;  %p373_p6 = scmp.lt.s32.totalorder (!%p311_p3), %s3146_s25, 1 }
   0x9   : > { %s3851_s30 = smov (%p31_p4, %s3849_s30), 0  ;;  %314 = sbr.rel (%p311_p3) target bundleno = 552 (0x228), region = 48 }
   0xa   : > { %p371_p5 = scmp.gt.s32.totalorder (!%p311_p3), %s2402_s12, 0  ;;  %p2403_p7 = scmp.lt.s32.totalorder (!%p311_p3), %s2402_s12, 1 }
   0xb   : > { %p386_p8 = scmp.lt.s32.totalorder (!%p311_p3), %s3142_s24, 1  ;;  %s392_s9 = sadd.s32 (!%p311_p3), 1, %s3142_s24 }
   0xc   : > { %p3309_p9 = scmp.lt.s32.totalorder (!%p311_p3), %s392_s9, 1  ;;  %p421_p10 = scmp.gt.s32.totalorder (!%p311_p3), %s3142_s24, 0 }
   0xd   : > { %s3161_s17 = smov (!%p311_p3), 124  }
   0xe   : > { %v482_v0 = vld [vmem:[%s3828_s3 + $0x80] sm:$0xff]  ;;  %vm577_vm0 = vcmask 1043456   ;;  %v483_v1 = vld [vmem:[%s3828_s3 + $0x88] sm:$0xff]  ;;  %v3160_v7 = vmov 0   ;;  %s3853_s12 = smov (!%p371_p5, %s2402_s12), 0  ;;  %s3855_s25 = smov (!%p373_p6, %s3146_s25), 1 }
   0xf   : > { %v2436_v2 = vcombine.high %v482_v0, %v482_v0  ;;  %v2438_v3 = vcombine.high %v483_v1, %v483_v1  ;;  %v2435_v4 = vcombine.low %v482_v0, %v482_v0  ;;  %v2437_v5 = vcombine.low %v483_v1, %v483_v1  ;;  %v2934_v6 = vld [vmem:[%s3828_s3 + $0x64] ss:$16 sps:$4 sm:$0xff]   ;;  %622 = vmatprep.mubr.bf16.mxu0 %v3160_v7  ;;  %v2936_v8 = vld [vmem:[%s3828_s3 + $0x6c] ss:$16 sps:$4 sm:$0xff]   ;;  %v2938_v9 = vld [vmem:[%s3828_s3 + $0x60] ss:$16 sps:$4 sm:$0xff]  }
  0x10   : > { %665 = vmatprep.mubr.bf16.mxu1 %v3160_v7  ;;  %v2939_v12 = vld [vmem:[%s3828_s3 + $0x68] ss:$16 sps:$4 sm:$0xff]   ;;  %v2940_v13 = vld [vmem:[%s3828_s3 + $0x44] ss:$16 sps:$4 sm:$0xff]   ;;  %v2942_v14 = vld [vmem:[%s3828_s3 + $0x4c] ss:$16 sps:$4 sm:$0xff]  }
  0x11   : > { %2439 = vmatprep.subr.msk.bf16.mxu0 %vm577_vm0, %v2436_v2  ;;  %2441 = vmatprep.subr.msk.bf16.mxu1 %vm577_vm0, %v2438_v3  ;;  %v579_v10 = vsel %vm577_vm0, %v2435_v4, 0  ;;  %v585_v11 = vsel %vm577_vm0, %v2437_v5, 0  ;;  %v2944_v15 = vld [vmem:[%s3828_s3 + $0x40] ss:$16 sps:$4 sm:$0xff]   ;;  %s3857_s12 = smov (!%p2403_p7, %s3853_s12), 1  ;;  %s3280_s16 = sshll.u32 %s3855_s25, 1 }
  0x12   : > { %597 = vmatpush1.bf16.msra.mxu0 %v579_v10  ;;  %640 = vmatpush1.bf16.msra.mxu1 %v585_v11  ;;  %v2945_v16 = vld [vmem:[%s3828_s3 + $0x48] ss:$16 sps:$4 sm:$0xff]   ;;  %v2946_v17 = vld [vmem:[%s3828_s3 + $0x24] ss:$16 sps:$4 sm:$0xff]   ;;  %v2948_v18 = vld [vmem:[%s3828_s3 + $0x2c] ss:$16 sps:$4 sm:$0xff]   ;;  %s378_s19 = sadd.s32 %s3857_s12, %s3280_s16 }
  0x13   : > { %598 = vmatprep.subr.bf16.mxu0 %v2934_v6  ;;  %641 = vmatprep.subr.bf16.mxu1 %v2936_v8  ;;  %s2409_s20 = sshll.u32 %s378_s19, 2  ;;  %v2950_v19 = vld [vmem:[%s3828_s3 + $0x20] ss:$16 sps:$4 sm:$0xff]   ;;  %v2951_v20 = vld [vmem:[%s3828_s3 + $0x28] ss:$16 sps:$4 sm:$0xff]   ;;  %s3859_s9 = smov (!%p3309_p9, %s392_s9), 1 }
  0x14   : > { %s380_s25 = scalar_lea.vmem %s3825_s0, %s2409_s20  ;;  %v2952_v21 = vld [vmem:[%s3828_s3 + $0x4] ss:$16 sps:$4 sm:$0xff]   ;;  %v2954_v22 = vld [vmem:[%s3828_s3 + $0xc] ss:$16 sps:$4 sm:$0xff]   ;;  %v2956_v26 = vld [vmem:[%s3828_s3] ss:$16 sps:$4 sm:$0xff]  }
  0x15   : > { %s387_s12 = scalar_select %p386_p8, %s3142_s24, 1  ;;  %v2459_v23 = vld [vmem:[%s3828_s3 + $0x110] sm:$0xff]  ;;  %v2460_v24 = vld [vmem:[%s3828_s3 + $0x118] sm:$0xff]  ;;  %v417_v25 = vld [vmem:[%s380_s25] sm:$0x8]  ;;  %vm433_vm1 = vcmask 588800  }
  0x16   : > { %599 = vmatpush1.bf16.msra.mxu0 %v2938_v9  ;;  %642 = vmatpush1.bf16.msra.mxu1 %v2939_v12  ;;  %v2957_v27 = vld [vmem:[%s3828_s3 + $0x8] ss:$16 sps:$4 sm:$0xff]   ;;  %v2478_v28 = vcombine.high %v2459_v23, %v2459_v23  ;;  %v2480_v29 = vcombine.high %v2460_v24, %v2460_v24  ;;  %v418_v32 = vunpack.c.l.bf16 %v417_v25  ;;  %s422_s25 = scalar_select %p421_p10, 1, 0  ;;  %vm431_vm2 = vcmask 588806   ;;  %v2501_v46 = vld [vmem:[%s3828_s3 + $0x1a0] sm:$0xff] }
  0x17   : > { %600 = vmatprep.subr.bf16.mxu0 %v2940_v13  ;;  %643 = vmatprep.subr.bf16.mxu1 %v2942_v14  ;;  %s3317_s23 = sadd.s32 %s3280_s16, %s387_s12  ;;  %s3861_s9 = smov (!%p3309_p9, %s3859_s9), 1  ;;  %vm435_vm5 = vcmask 582656   ;;  %v2477_v41 = vcombine.low %v2459_v23, %v2459_v23  ;;  %v2479_v42 = vcombine.low %v2460_v24, %v2460_v24  ;;  %v2962_v44 = vld [vmem:[%s3828_s3 + $0xf4] ss:$16 sps:$4 sm:$0xff]   ;;  %v2502_v47 = vld [vmem:[%s3828_s3 + $0x1a8] sm:$0xff]  ;;  %v2519_v53 = vcombine.low %v2501_v46, %v2501_v46 }
  0x18   : > { %s2411_s8 = sshll.u32 %s3317_s23, 2  ;;  %v423_v33 = vstv %s422_s25  ;;  %s400_s19 = sadd.s32 %s3280_s16, %s3861_s9  ;;  %v2965_v51 = vld [vmem:[%s3828_s3 + $0xfc] ss:$16 sps:$4 sm:$0xff]   ;;  %v2960_v52 = vld [vmem:[%s3828_s3 + $0xf0] ss:$16 sps:$4 sm:$0xff]   ;;  %v2521_v54 = vcombine.low %v2502_v47, %v2502_v47  ;;  %v2520_v9 = vcombine.high %v2501_v46, %v2501_v46  ;;  %v2522_v10 = vcombine.high %v2502_v47, %v2502_v47 }
  0x19   : > { %s3330_s12 = scalar_lea.vmem %s3826_s1, %s2411_s8  ;;  %vm3345_vm3 = vcmp.eq.s32.totalorder %v423_v33, 1  ;;  %s2416_s21 = sshll.u32 %s400_s19, 2  ;;  %v800_v49 = vsel %vm577_vm0, %v2477_v41, 0  ;;  %v806_v50 = vsel %vm577_vm0, %v2479_v42, 0  ;;  %v2963_v55 = vld [vmem:[%s3828_s3 + $0xf8] ss:$16 sps:$4 sm:$0xff]  }
  0x1a   : > { %601 = vmatpush1.bf16.msra.mxu0 %v2944_v15  ;;  %644 = vmatpush1.bf16.msra.mxu1 %v2945_v16  ;;  %v415_v30 = vld [vmem:[%s3330_s12] sm:$0xf]  ;;  %s427_s18 = scalar_select %p386_p8, 1, 0  ;;  %v425_v35 = vsel %vm3345_vm3, %v418_v32, 0.0  ;;  %v1021_v62 = vsel %vm577_vm0, %v2519_v53, 0 }
  0x1b   : > { %602 = vmatprep.subr.bf16.mxu0 %v2946_v17  ;;  %645 = vmatprep.subr.bf16.mxu1 %v2948_v18  ;;  %v416_v31 = vunpack.c.l.bf16 %v415_v30  ;;  %s402_s22 = scalar_lea.vmem %s3827_s2, %s2416_s21  ;;  %432 = vst.msk [vmem:[#allocation2 - $0x6] sm:$0xc0] %vm431_vm2, %v425_v35  ;;  %v2968_v56 = vld [vmem:[%s3828_s3 + $0xd4] ss:$16 sps:$4 sm:$0xff]   ;;  %v2971_v57 = vld [vmem:[%s3828_s3 + $0xdc] ss:$16 sps:$4 sm:$0xff]  }
  0x1c   : > { %v428_v36 = vstv %s427_s18  ;;  %v419_v37 = vld [vmem:[%s402_s22] sm:$0x1]  ;;  %v2969_v59 = vld [vmem:[%s3828_s3 + $0xd8] ss:$16 sps:$4 sm:$0xff]   ;;  %v2974_v60 = vld [vmem:[%s3828_s3 + $0xb4] ss:$16 sps:$4 sm:$0xff]  }
  0x1d   : > { %434 = vst.msk [vmem:[#allocation2 + $0x2] sm:$0xff] %vm433_vm1, %v416_v31  ;;  %vm3354_vm4 = vcmp.eq.s32.totalorder %v428_v36, 1  ;;  %v420_v39 = vunpack.c.l.bf16 %v419_v37  ;;  %v2966_v58 = vld [vmem:[%s3828_s3 + $0xd0] ss:$16 sps:$4 sm:$0xff]   ;;  %v2977_v61 = vld [vmem:[%s3828_s3 + $0xbc] ss:$16 sps:$4 sm:$0xff]  }
  0x1e   : > { %603 = vmatpush1.bf16.msra.mxu0 %v2950_v19  ;;  %646 = vmatpush1.bf16.msra.mxu1 %v2951_v20  ;;  %v1027_v63 = vsel %vm577_vm0, %v2521_v54, 0  ;;  %v2972_v0 = vld [vmem:[%s3828_s3 + $0xb0] ss:$16 sps:$4 sm:$0xff]   ;;  %v2975_v1 = vld [vmem:[%s3828_s3 + $0xb8] ss:$16 sps:$4 sm:$0xff]   ;;  %s2418_s9 = sshll.u32 %s3317_s23, 3 }
  0x1f   : > { %604 = vmatprep.subr.bf16.mxu0 %v2952_v21  ;;  %647 = vmatprep.subr.bf16.mxu1 %v2954_v22  ;;  %v430_v40 = vsel %vm3354_vm4, %v420_v39, 0.0  ;;  %v2980_v2 = vld [vmem:[%s3828_s3 + $0x94] ss:$16 sps:$4 sm:$0xff]   ;;  %v2983_v3 = vld [vmem:[%s3828_s3 + $0x9c] ss:$16 sps:$4 sm:$0xff]   ;;  %s413_s11 = scalar_lea.vmem %s3832_s7, %s2418_s9  ;;  %vm2271_vm11 = vcmask 523264  }
  0x20   : > { %436 = vst.msk [vmem:[#allocation2 + $0xa] sm:$0x3] %vm435_vm5, %v430_v40  ;;  %v2978_v4 = vld [vmem:[%s3828_s3 + $0x90] ss:$16 sps:$4 sm:$0xff]   ;;  %v2981_v5 = vld [vmem:[%s3828_s3 + $0x98] ss:$16 sps:$4 sm:$0xff]  }
  0x21   : > { %v2990_v12 = vld [vmem:[%s3828_s3 + $0x184] ss:$16 sps:$4 sm:$0xff]   ;;  %v2993_v13 = vld [vmem:[%s3828_s3 + $0x18c] ss:$16 sps:$4 sm:$0xff]   ;;  %v2988_v14 = vld [vmem:[%s3828_s3 + $0x180] ss:$16 sps:$4 sm:$0xff]  }
  0x22   : > { %605 = vmatpush1.bf16.msra.mxu0 %v2956_v26  ;;  %648 = vmatpush1.bf16.msra.mxu1 %v2957_v27  ;;  %v2991_v15 = vld [vmem:[%s3828_s3 + $0x188] ss:$16 sps:$4 sm:$0xff]   ;;  %v2996_v16 = vld [vmem:[%s3828_s3 + $0x164] ss:$16 sps:$4 sm:$0xff]   ;;  %v2999_v17 = vld [vmem:[%s3828_s3 + $0x16c] ss:$16 sps:$4 sm:$0xff]  }
  0x23   : > { %2481 = vmatprep.subr.msk.bf16.mxu0 %vm577_vm0, %v2478_v28  ;;  %2483 = vmatprep.subr.msk.bf16.mxu1 %vm577_vm0, %v2480_v29  ;;  %v2994_v18 = vld [vmem:[%s3828_s3 + $0x160] ss:$16 sps:$4 sm:$0xff]   ;;  %v2997_v19 = vld [vmem:[%s3828_s3 + $0x168] ss:$16 sps:$4 sm:$0xff]   ;;  %v3002_v20 = vld [vmem:[%s3828_s3 + $0x144] ss:$16 sps:$4 sm:$0xff]  }
  0x24   : > { %v464_v43 = vld [vmem:[#allocation2 + $0x8] sm:$0x3]  ;;  %v463_v45 = vld [vmem:[#allocation2] sm:$0xff]  ;;  %v3005_v21 = vld [vmem:[%s3828_s3 + $0x14c] ss:$16 sps:$4 sm:$0xff]  }
  0x25   : > { %v465_v48 = vpack.c.bf16 %v464_v43, %v463_v45  ;;  %v684_v6 = vld [vmem:[#allocation2 + $0x1] sm:$0xff]  ;;  %v3011_v24 = vld [vmem:[%s3828_s3 + $0x12c] ss:$16 sps:$4 sm:$0xff]   ;;  %v3016_v35 = vld [vmem:[%s3830_s5 + $0x70] sm:$0xff]  }
  0x26   : > { %v3000_v22 = vld [vmem:[%s3828_s3 + $0x140] ss:$16 sps:$4 sm:$0xff]   ;;  %v3008_v23 = vld [vmem:[%s3828_s3 + $0x124] ss:$16 sps:$4 sm:$0xff]   ;;  %v3009_v26 = vld [vmem:[%s3828_s3 + $0x128] ss:$16 sps:$4 sm:$0xff]  }
  0x27   : > { %2440 = vmatmul.mubr.msk.bf16.vlgmr.msra.gmra.mxu0 %vm433_vm1, %v465_v48  ;;  %2442 = vmatmul.mubr.msk.bf16.vlgmr.msra.gmra.mxu1 %vm433_vm1, %v465_v48  ;;  %v685_v8 = vld [vmem:[#allocation2 + $0x9] sm:$0x3]  ;;  %v3006_v25 = vld [vmem:[%s3828_s3 + $0x120] ss:$16 sps:$4 sm:$0xff]   ;;  %v3012_v30 = vld [vmem:[%s3830_s5 + $0x78] sm:$0xff]  }
  0x28   : > { %818 = vmatpush1.bf16.msra.mxu0 %v800_v49  ;;  %861 = vmatpush1.bf16.msra.mxu1 %v806_v50  ;;  %v686_v11 = vpack.c.bf16 %v685_v8, %v684_v6  ;;  %v905_v27 = vld [vmem:[#allocation2 + $0x2] sm:$0xff]  ;;  %v906_v28 = vld [vmem:[#allocation2 + $0xa] sm:$0x3]  ;;  %v3013_v31 = vld [vmem:[%s3830_s5 + $0xf8] sm:$0xff]  }
  0x29   : > { %819 = vmatprep.subr.bf16.mxu0 %v2962_v44  ;;  %862 = vmatprep.subr.bf16.mxu1 %v2965_v51  ;;  %v907_v29 = vpack.c.bf16 %v906_v28, %v905_v27  ;;  %v3014_v32 = vld [vmem:[%s3830_s5 + $0x38] sm:$0xff]   ;;  %v3017_v36 = vld [vmem:[%s3830_s5 + $0xf0] sm:$0xff]   ;;  %v3020_v40 = vld [vmem:[%s3830_s5 + $0x68] sm:$0xff]  }
  0x2a   : > { %843 = vmatprep.mubr.bf16.mxu0 %v3160_v7  ;;  %886 = vmatprep.mubr.bf16.mxu1 %v3160_v7  ;;  %v3015_v33 = vld [vmem:[%s3830_s5 + $0xb8] sm:$0xff]   ;;  %v3018_v37 = vld [vmem:[%s3830_s5 + $0x30] sm:$0xff]   ;;  %v3021_v41 = vld [vmem:[%s3830_s5 + $0xe8] sm:$0xff]  }
  0x2b   : > { %v3019_v39 = vld [vmem:[%s3830_s5 + $0xb0] sm:$0xff]   ;;  %v3022_v42 = vld [vmem:[%s3830_s5 + $0x28] sm:$0xff]   ;;  %v3024_v44 = vld [vmem:[%s3830_s5 + $0x60] sm:$0xff]  }
  0x2c   : > { %820 = vmatpush1.bf16.msra.mxu0 %v2960_v52  ;;  %863 = vmatpush1.bf16.msra.mxu1 %v2963_v55  ;;  %v3023_v43 = vld [vmem:[%s3830_s5 + $0xa8] sm:$0xff]   ;;  %v3025_v45 = vld [vmem:[%s3830_s5 + $0xe0] sm:$0xff]   ;;  %v3028_v48 = vld [vmem:[%s3830_s5 + $0x58] sm:$0xff]  }
  0x2d   : > { %821 = vmatprep.subr.bf16.mxu0 %v2968_v56  ;;  %864 = vmatprep.subr.bf16.mxu1 %v2971_v57  ;;  %v3026_v46 = vld [vmem:[%s3830_s5 + $0x20] sm:$0xff]   ;;  %v3029_v49 = vld [vmem:[%s3830_s5 + $0xd8] sm:$0xff]   ;;  %v3032_v52 = vld [vmem:[%s3830_s5 + $0x50] sm:$0xff]  }
  0x2e   : > { %v3027_v47 = vld [vmem:[%s3830_s5 + $0xa0] sm:$0xff]   ;;  %v3030_v50 = vld [vmem:[%s3830_s5 + $0x18] sm:$0xff]   ;;  %v3033_v53 = vld [vmem:[%s3830_s5 + $0xd0] sm:$0xff]  }
  0x2f   : > { %v3031_v51 = vld [vmem:[%s3830_s5 + $0x98] sm:$0xff]   ;;  %v3034_v54 = vld [vmem:[%s3830_s5 + $0x10] sm:$0xff]   ;;  %v3036_v56 = vld [vmem:[%s3830_s5 + $0x48] sm:$0xff]  }
  0x30   : > { %822 = vmatpush1.bf16.msra.mxu0 %v2966_v58  ;;  %865 = vmatpush1.bf16.msra.mxu1 %v2969_v59  ;;  %v3035_v55 = vld [vmem:[%s3830_s5 + $0x90] sm:$0xff]   ;;  %v3037_v57 = vld [vmem:[%s3830_s5 + $0xc8] sm:$0xff]  }
  0x31   : > { %823 = vmatprep.subr.bf16.mxu0 %v2974_v60  ;;  %866 = vmatprep.subr.bf16.mxu1 %v2977_v61  ;;  %v3038_v58 = vld [vmem:[%s3830_s5 + $0x8] sm:$0xff]   ;;  %v3040_v60 = vld [vmem:[%s3830_s5 + $0x40] sm:$0xff]  }
  0x32   : > { %v3039_v59 = vld [vmem:[%s3830_s5 + $0x88] sm:$0xff]   ;;  %v3041_v61 = vld [vmem:[%s3830_s5 + $0xc0] sm:$0xff]  }
  0x34   : > { %824 = vmatpush1.bf16.msra.mxu0 %v2972_v0  ;;  %867 = vmatpush1.bf16.msra.mxu1 %v2975_v1  ;;  %v3044_v0 = vld [vmem:[%s3830_s5 + $0x178] sm:$0xff]  }
  0x35   : > { %825 = vmatprep.subr.bf16.mxu0 %v2980_v2  ;;  %868 = vmatprep.subr.bf16.mxu1 %v2983_v3  ;;  %v3045_v1 = vld [vmem:[%s3830_s5 + $0x1f8] sm:$0xff]   ;;  %v2264_v2 = vld [vmem:[%s3330_s12] sm:$0xf] }
  0x36   : > { %v2265_v3 = vunpack.c.l.bf16 %v2264_v2 }
  0x38   : > { %826 = vmatpush1.bf16.msra.mxu0 %v2978_v4  ;;  %869 = vmatpush1.bf16.msra.mxu1 %v2981_v5 }
  0x39   : > { %2523 = vmatprep.subr.msk.bf16.mxu0 %vm577_vm0, %v2520_v9  ;;  %2525 = vmatprep.subr.msk.bf16.mxu1 %vm577_vm0, %v2522_v10 }
  0x3a   : > { %2267 = vrot.lane.b32.xlu0 %v2265_v3, %s3161_s17 }
  0x3b   : > { %2482 = vmatmul.mubr.msk.bf16.vlgmr.msra.gmra.mxu0 %vm433_vm1, %v686_v11  ;;  %2484 = vmatmul.mubr.msk.bf16.vlgmr.msra.gmra.mxu1 %vm433_vm1, %v686_v11  ;;  %v439_v11 = vlaneseq }
  0x3c   : > { %1039 = vmatpush1.bf16.msra.mxu0 %v1021_v62  ;;  %1082 = vmatpush1.bf16.msra.mxu1 %v1027_v63  ;;  %v3042_v62 = vld [vmem:[%s3830_s5] sm:$0xff]  }
  0x3d   : > { %1040 = vmatprep.subr.bf16.mxu0 %v2990_v12  ;;  %1083 = vmatprep.subr.bf16.mxu1 %v2993_v13  ;;  %v3043_v63 = vld [vmem:[%s3830_s5 + $0x80] sm:$0xff]  }
  0x3e   : > { %1064 = vmatprep.mubr.bf16.mxu0 %v3160_v7  ;;  %1107 = vmatprep.mubr.bf16.mxu1 %v3160_v7  ;;  %v3003_v7 = vld [vmem:[%s3828_s3 + $0x148] ss:$16 sps:$4 sm:$0xff]  }
  0x40   : > { %1041 = vmatpush1.bf16.msra.mxu0 %v2988_v14  ;;  %1084 = vmatpush1.bf16.msra.mxu1 %v2991_v15  ;;  %v440_v14 = vshrl.u32 %v439_v11, 7 }
  0x41   : > { %1042 = vmatprep.subr.bf16.mxu0 %v2996_v16  ;;  %1085 = vmatprep.subr.bf16.mxu1 %v2999_v17 }
  0x42   : > { %v441_v17 = vsub.s32 0, %v440_v14  ;;  %vm1137_vm6 = vcmp.ge.s32.totalorder %v440_v14, 1 }
  0x43   : > { %vm3587_vm8 = vmor %vm1137_vm6, %vm3345_vm3 }
  0x44   : > { %1043 = vmatpush1.bf16.msra.mxu0 %v2994_v18  ;;  %1086 = vmatpush1.bf16.msra.mxu1 %v2997_v19  ;;  %v449_v18 = vsub.s32 2, %v440_v14  ;;  %v437_v19 = vld [vmem:[%s3829_s4] sm:$0xf]  ;;  %vm3108_vm10 = vmpackc.low %vm3587_vm8, %vm3587_vm8 }
  0x45   : > { %1044 = vmatprep.subr.bf16.mxu0 %v3002_v20  ;;  %1087 = vmatprep.subr.bf16.mxu1 %v3005_v21 }
  0x48   : > { %1045 = vmatpush1.bf16.msra.mxu0 %v3000_v22  ;;  %1088 = vmatpush1.bf16.msra.mxu1 %v3003_v7  ;;  %v445_v22 = vsub.s32 1, %v440_v14  ;;  %v453_v7 = vsub.s32 3, %v440_v14 }
  0x49   : > { %1046 = vmatprep.subr.bf16.mxu0 %v3008_v23  ;;  %1089 = vmatprep.subr.bf16.mxu1 %v3011_v24  ;;  %v442_v23 = vrot.slane %v437_v19, %v441_v17  ;;  %v450_v24 = vrot.slane %v437_v19, %v449_v18  ;;  %v3048_v17 = vld [vmem:[%s3830_s5 + $0x170] sm:$0xff]  }
  0x4a   : > { %v446_v27 = vrot.slane %v437_v19, %v445_v22  ;;  %v454_v28 = vrot.slane %v437_v19, %v453_v7  ;;  %v3049_v18 = vld [vmem:[%s3830_s5 + $0x1f0] sm:$0xff]  }
  0x4c   : > { %1047 = vmatpush1.bf16.msra.mxu0 %v3006_v25  ;;  %1090 = vmatpush1.bf16.msra.mxu1 %v3009_v26 }
  0x4d   : > { %2756 = vmatprep.subr.bf16.mxu0 %v3012_v30  ;;  %2778 = vmatprep.subr.bf16.mxu1 %v3013_v31 }
  0x4f   : > { %2524 = vmatmul.mubr.msk.bf16.vlgmr.msra.gmra.mxu0 %vm433_vm1, %v907_v29  ;;  %2526 = vmatmul.mubr.msk.bf16.vlgmr.msra.gmra.mxu1 %vm433_vm1, %v907_v29  ;;  %v1136_v29 = vadd.s32 8, %v440_v14  ;;  %v3046_v14 = vld [vmem:[%s3830_s5 + $0x138] sm:$0xff]  }
  0x50   : > { %2757 = vmatpush3.bf16.msra.mxu0 %v3014_v32  ;;  %2779 = vmatpush3.bf16.msra.mxu1 %v3015_v33 }
  0x51   : > { %2758 = vmatprep.subr.bf16.mxu0 %v3016_v35  ;;  %2780 = vmatprep.subr.bf16.mxu1 %v3017_v36  ;;  %vm1142_vm7 = vcmp.le.s32.totalorder %v1136_v29, 8  ;;  %v3053_v29 = vld [vmem:[%s3830_s5 + $0x1e8] sm:$0xff]  }
  0x52   : > { %vm3602_vm9 = vmor %vm1142_vm7, %vm3354_vm4 }
  0x54   : > { %2759 = vmatpush3.bf16.msra.mxu0 %v3018_v37  ;;  %2781 = vmatpush3.bf16.msra.mxu1 %v3019_v39 }
  0x55   : > { %2760 = vmatprep.subr.bf16.mxu0 %v3020_v40  ;;  %2782 = vmatprep.subr.bf16.mxu1 %v3021_v41 }
  0x58   : > { %2761 = vmatpush3.bf16.msra.mxu0 %v3022_v42  ;;  %2783 = vmatpush3.bf16.msra.mxu1 %v3023_v43 }
  0x59   : > { %2762 = vmatprep.subr.bf16.mxu0 %v3024_v44  ;;  %2784 = vmatprep.subr.bf16.mxu1 %v3025_v45 }
  0x5c   : > { %2763 = vmatpush3.bf16.msra.mxu0 %v3026_v46  ;;  %2785 = vmatpush3.bf16.msra.mxu1 %v3027_v47 }
  0x5d   : > { %2764 = vmatprep.subr.bf16.mxu0 %v3028_v48  ;;  %2786 = vmatprep.subr.bf16.mxu1 %v3029_v49 }
  0x60   : > { %2765 = vmatpush3.bf16.msra.mxu0 %v3030_v50  ;;  %2787 = vmatpush3.bf16.msra.mxu1 %v3031_v51 }
  0x61   : > { %2766 = vmatprep.subr.bf16.mxu0 %v3032_v52  ;;  %2788 = vmatprep.subr.bf16.mxu1 %v3033_v53 }
  0x64   : > { %2767 = vmatpush3.bf16.msra.mxu0 %v3034_v54  ;;  %2789 = vmatpush3.bf16.msra.mxu1 %v3035_v55 }
  0x65   : > { %2768 = vmatprep.subr.bf16.mxu0 %v3036_v56  ;;  %2790 = vmatprep.subr.bf16.mxu1 %v3037_v57 }
  0x68   : > { %2769 = vmatpush3.bf16.msra.mxu0 %v3038_v58  ;;  %2791 = vmatpush3.bf16.msra.mxu1 %v3039_v59 }
  0x69   : > { %2770 = vmatprep.subr.bf16.mxu0 %v3040_v60  ;;  %2792 = vmatprep.subr.bf16.mxu1 %v3041_v61 }
  0x6c   : > { %2771 = vmatpush3.bf16.msra.mxu0 %v3042_v62  ;;  %2793 = vmatpush3.bf16.msra.mxu1 %v3043_v63 }
  0x6d   : > { %2800 = vmatprep.subr.bf16.mxu0 %v3044_v0  ;;  %2822 = vmatprep.subr.bf16.mxu1 %v3045_v1 }
  0xe7   : > { %v624_v4 = vpop.f32.mrf.mxu0  ;;  %v667_v5 = vpop.f32.mrf.mxu1 }
  0xe8   : > { %v676_v30 = vadd.f32 %v624_v4, %v442_v23  ;;  %v678_v31 = vadd.f32 %v667_v5, %v450_v24 }
  0xe9   : > { %v626_v6 = vpop.f32.mrf.mxu0  ;;  %v669_v8 = vpop.f32.mrf.mxu1 }
  0xea   : > { %v677_v35 = vadd.f32 %v626_v6, %v446_v27  ;;  %v679_v36 = vadd.f32 %v669_v8, %v454_v28 }
  0xeb   : > { %v628_v9 = vpop.f32.mrf.mxu0  ;;  %v671_v10 = vpop.f32.mrf.mxu1 }
  0xec   : > { %v680_v46 = vadd.f32 %v628_v9, %v442_v23  ;;  %v682_v47 = vadd.f32 %v671_v10, %v450_v24 }
  0xed   : > { %v630_v12 = vpop.f32.mrf.mxu0  ;;  %v673_v13 = vpop.f32.mrf.mxu1 }
  0xee   : > { %v681_v48 = vadd.f32 %v630_v12, %v446_v27  ;;  %v683_v49 = vadd.f32 %v673_v13, %v454_v28  ;;  %v3051_v27 = vld [vmem:[%s3830_s5 + $0x1b0] sm:$0xff]   ;;  %v3052_v28 = vld [vmem:[%s3830_s5 + $0x168] sm:$0xff]  }
  0xfb   : > { %v845_v15 = vpop.f32.mrf.mxu0  ;;  %v888_v16 = vpop.f32.mrf.mxu1 }
  0xfc   : > { %v897_v37 = vadd.f32 %v845_v15, %v676_v30  ;;  %v899_v39 = vadd.f32 %v888_v16, %v678_v31  ;;  %v3047_v15 = vld [vmem:[%s3830_s5 + $0x1b8] sm:$0xff]   ;;  %v3054_v30 = vld [vmem:[%s3830_s5 + $0x128] sm:$0xff]  }
  0xfd   : > { %v847_v20 = vpop.f32.mrf.mxu0  ;;  %v890_v21 = vpop.f32.mrf.mxu1  ;;  %v3055_v31 = vld [vmem:[%s3830_s5 + $0x1a8] sm:$0xff]  }
  0xfe   : > { %v898_v42 = vadd.f32 %v847_v20, %v677_v35  ;;  %v900_v43 = vadd.f32 %v890_v21, %v679_v36 }
  0xff   : > { %v849_v25 = vpop.f32.mrf.mxu0  ;;  %v892_v26 = vpop.f32.mrf.mxu1 }
 0x100   : > { %v901_v57 = vadd.f32 %v849_v25, %v680_v46  ;;  %v903_v58 = vadd.f32 %v892_v26, %v682_v47  ;;  %v3050_v26 = vld [vmem:[%s3830_s5 + $0x130] sm:$0xff]  }
 0x101   : > { %v851_v32 = vpop.f32.mrf.mxu0  ;;  %v894_v33 = vpop.f32.mrf.mxu1 }
 0x102   : > { %v902_v59 = vadd.f32 %v851_v32, %v681_v48  ;;  %v904_v60 = vadd.f32 %v894_v33, %v683_v49  ;;  %v3056_v32 = vld [vmem:[%s3830_s5 + $0x160] sm:$0xff]  }
 0x103   : > { %v3057_v33 = vld [vmem:[%s3830_s5 + $0x1e0] sm:$0xff]  }
 0x10f   : > { %v1066_v40 = vpop.f32.mrf.mxu0  ;;  %v1109_v41 = vpop.f32.mrf.mxu1 }
 0x110   : > { %v1118_v44 = vadd.f32 %v1066_v40, %v897_v37  ;;  %v1120_v45 = vadd.f32 %v1109_v41, %v899_v39 }
 0x111   : > { %v1068_v51 = vpop.f32.mrf.mxu0  ;;  %v1111_v52 = vpop.f32.mrf.mxu1 }
 0x112   : > { %v1126_v53 = vmax.f32 %v1118_v44, 0.0  ;;  %v1128_v54 = vmax.f32 %v1120_v45, 0.0  ;;  %v1119_v55 = vadd.f32 %v1068_v51, %v898_v42  ;;  %v1121_v56 = vadd.f32 %v1111_v52, %v900_v43  ;;  %v3058_v42 = vld [vmem:[%s3830_s5 + $0x120] sm:$0xff]   ;;  %v3060_v44 = vld [vmem:[%s3830_s5 + $0x158] sm:$0xff]  }
 0x113   : > { %v1070_v61 = vpop.f32.mrf.mxu0  ;;  %v1113_v62 = vpop.f32.mrf.mxu1  ;;  %v3059_v43 = vld [vmem:[%s3830_s5 + $0x1a0] sm:$0xff]   ;;  %v3061_v45 = vld [vmem:[%s3830_s5 + $0x1d8] sm:$0xff]  }
 0x114   : > { %v1151_v34 = vsel %vm3587_vm8, %v1126_v53, 0.0  ;;  %v1153_v63 = vsel %vm3587_vm8, %v1128_v54, 0.0  ;;  %v1127_v0 = vmax.f32 %v1119_v55, 0.0  ;;  %v1129_v1 = vmax.f32 %v1121_v56, 0.0  ;;  %v3062_v52 = vld [vmem:[%s3830_s5 + $0x118] sm:$0xff]   ;;  %v3064_v56 = vld [vmem:[%s3830_s5 + $0x150] sm:$0xff]  }
 0x115   : > { %1159 = vst [vmem:[#allocation3 + $0x30] sm:$0xff] %v1151_v34  ;;  %1161 = vst [vmem:[#allocation3 + $0x18] sm:$0xff] %v1153_v63  ;;  %v1122_v2 = vadd.f32 %v1070_v61, %v901_v57  ;;  %v1124_v3 = vadd.f32 %v1113_v62, %v903_v58  ;;  %v1072_v4 = vpop.f32.mrf.mxu0  ;;  %v1115_v5 = vpop.f32.mrf.mxu1  ;;  %v3115_v24 = vpack.c.bf16 %v1126_v53, %v1126_v53  ;;  %v3063_v53 = vld [vmem:[%s3830_s5 + $0x198] sm:$0xff]   ;;  %v3065_v57 = vld [vmem:[%s3830_s5 + $0x1d0] sm:$0xff]  }
 0x116   : > { %v1152_v6 = vsel %vm3587_vm8, %v1127_v0, 0.0  ;;  %v1154_v8 = vsel %vm3587_vm8, %v1129_v1, 0.0  ;;  %v1123_v10 = vadd.f32 %v1072_v4, %v902_v59  ;;  %v1125_v11 = vadd.f32 %v1115_v5, %v904_v60  ;;  %v3066_v60 = vld [vmem:[%s3830_s5 + $0x110] sm:$0xff]   ;;  %v3068_v63 = vld [vmem:[%s3830_s5 + $0x148] sm:$0xff]   ;;  %v3072_v5 = vld [vmem:[%s3830_s5 + $0x140] sm:$0xff]  }
 0x117   : > { %1160 = vst [vmem:[#allocation3] sm:$0xff] %v1152_v6  ;;  %1162 = vst [vmem:[#allocation3 + $0x10] sm:$0xff] %v1154_v8  ;;  %v1130_v12 = vmax.f32 %v1122_v2, 0.0  ;;  %v1132_v13 = vmax.f32 %v1124_v3, 0.0  ;;  %v3109_v21 = vpack.c.bf16 %v1127_v0, %v1127_v0  ;;  %v3112_v22 = vpack.c.bf16 %v1129_v1, %v1129_v1  ;;  %v3067_v61 = vld [vmem:[%s3830_s5 + $0x190] sm:$0xff]   ;;  %v3069_v0 = vld [vmem:[%s3830_s5 + $0x1c8] sm:$0xff]  }
 0x118   : > { %v1131_v38 = vmax.f32 %v1123_v10, 0.0  ;;  %v1133_v16 = vmax.f32 %v1125_v11, 0.0  ;;  %v3118_v25 = vpack.c.bf16 %v1128_v54, %v1128_v54  ;;  %v3070_v3 = vld [vmem:[%s3830_s5 + $0x108] sm:$0xff]   ;;  %v3073_v6 = vld [vmem:[%s3830_s5 + $0x1c0] sm:$0xff]  }
 0x119   : > { %v1155_v19 = vsel %vm3602_vm9, %v1130_v12, 0.0  ;;  %v1157_v20 = vsel %vm3602_vm9, %v1132_v13, 0.0  ;;  %3110 = vmatprep.mubr.msk.bf16.mxu0 %vm3108_vm10, %v3109_v21  ;;  %3113 = vmatprep.mubr.msk.bf16.mxu1 %vm3108_vm10, %v3112_v22  ;;  %v3071_v4 = vld [vmem:[%s3830_s5 + $0x188] sm:$0xff]   ;;  %v3074_v11 = vld [vmem:[%s3830_s5 + $0x100] sm:$0xff]  }
 0x11a   : > { %1163 = vst [vmem:[#allocation3 + $0x8] sm:$0x3] %v1155_v19  ;;  %1165 = vst [vmem:[#allocation3 + $0x28] sm:$0x3] %v1157_v20  ;;  %v1156_v7 = vsel %vm3602_vm9, %v1131_v38, 0.0  ;;  %v1158_v23 = vsel %vm3602_vm9, %v1133_v16, 0.0  ;;  %3116 = vmatmul.mubr.msk.bf16.vlgmr.msra.gmra.mxu0 %vm3108_vm10, %v3115_v24  ;;  %3119 = vmatmul.mubr.msk.bf16.vlgmr.msra.gmra.mxu1 %vm3108_vm10, %v3118_v25 }
 0x11b   : > { %1164 = vst [vmem:[#allocation3 + $0x20] sm:$0x3] %v1156_v7  ;;  %1166 = vst [vmem:[#allocation3 + $0x38] sm:$0x3] %v1158_v23  ;;  %2801 = vmatpush3.bf16.msra.mxu0 %v3046_v14  ;;  %2823 = vmatpush3.bf16.msra.mxu1 %v3047_v15  ;;  %v3075_v12 = vld [vmem:[%s3830_s5 + $0x180] sm:$0xff]   ;;  %v3076_v38 = vld [vmem:[%s3830_s5 + $0x278] sm:$0xff]  }
 0x11c   : > { %2802 = vmatprep.subr.bf16.mxu0 %v3048_v17  ;;  %2824 = vmatprep.subr.bf16.mxu1 %v3049_v18  ;;  %v1520_v62 = vld [vmem:[#allocation3 + $0x30] sm:$0xfe]  ;;  %v1522_v34 = vld [vmem:[#allocation3 + $0x18] sm:$0xfe]  ;;  %v3077_v16 = vld [vmem:[%s3830_s5 + $0x2f8] sm:$0xff]  }
 0x11d   : > { %v3078_v7 = vld [vmem:[%s3830_s5 + $0x238] sm:$0xff]  }
 0x11e   : > { %v1521_v35 = vld [vmem:[#allocation3] sm:$0xfe]  ;;  %v1523_v37 = vld [vmem:[#allocation3 + $0x10] sm:$0xfe]  ;;  %v3079_v25 = vld [vmem:[%s3830_s5 + $0x2b8] sm:$0xff]  }
 0x11f   : > { %2803 = vmatpush3.bf16.msra.mxu0 %v3050_v26  ;;  %2825 = vmatpush3.bf16.msra.mxu1 %v3051_v27  ;;  %v1903_v17 = vld [vmem:[#allocation3] sm:$0xfc]  ;;  %v1905_v19 = vld [vmem:[#allocation3 + $0x10] sm:$0xfc] }
 0x120   : > { %2804 = vmatprep.subr.bf16.mxu0 %v3052_v28  ;;  %2826 = vmatprep.subr.bf16.mxu1 %v3053_v29  ;;  %v3080_v27 = vld [vmem:[%s3830_s5 + $0x270] sm:$0xff]  }
 0x121   : > { %v1524_v58 = vld [vmem:[#allocation3 + $0x8] sm:$0x1]  ;;  %v3081_v28 = vld [vmem:[%s3830_s5 + $0x2f0] sm:$0xff]  }
 0x122   : > { %v1525_v36 = vld [vmem:[#allocation3 + $0x20] sm:$0x1]  ;;  %v1527_v39 = vld [vmem:[#allocation3 + $0x38] sm:$0x1]  ;;  %v1526_v59 = vld [vmem:[#allocation3 + $0x28] sm:$0x1]  ;;  %v1528_v1 = vpack.c.bf16 %v1524_v58, %v1520_v62 }
 0x123   : > { %2805 = vmatpush3.bf16.msra.mxu0 %v3054_v30  ;;  %2827 = vmatpush3.bf16.msra.mxu1 %v3055_v31  ;;  %v1529_v40 = vpack.c.bf16 %v1525_v36, %v1521_v35  ;;  %v1531_v41 = vpack.c.bf16 %v1527_v39, %v1523_v37  ;;  %v1530_v2 = vpack.c.bf16 %v1526_v59, %v1522_v34  ;;  %v1907_v10 = vld [vmem:[#allocation3 + $0x20] sm:$0x3]  ;;  %v1909_v13 = vld [vmem:[#allocation3 + $0x38] sm:$0x3]  ;;  %v3088_v37 = vld [vmem:[%s3830_s5 + $0x260] sm:$0xff]  }
 0x124   : > { %2806 = vmatprep.subr.bf16.mxu0 %v3056_v32  ;;  %2828 = vmatprep.subr.bf16.mxu1 %v3057_v33  ;;  %v1600_v8 = vshll.u32 %v1528_v1, 16  ;;  %v1911_v18 = vpack.c.bf16 %v1907_v10, %v1903_v17  ;;  %v1598_v20 = vshrl.u32 %v1528_v1, 16  ;;  %v1913_v22 = vpack.c.bf16 %v1909_v13, %v1905_v19  ;;  %v3082_v30 = vld [vmem:[%s3830_s5 + $0x230] sm:$0xff]   ;;  %v3084_v32 = vld [vmem:[%s3830_s5 + $0x268] sm:$0xff]   ;;  %v3089_v39 = vld [vmem:[%s3830_s5 + $0x2e0] sm:$0xff]  }
 0x125   : > { %v1607_v46 = vshll.u32 %v1529_v40, 16  ;;  %v1621_v47 = vshll.u32 %v1531_v41, 16  ;;  %v1605_v48 = vshrl.u32 %v1529_v40, 16  ;;  %v1619_v50 = vshrl.u32 %v1531_v41, 16  ;;  %v3083_v31 = vld [vmem:[%s3830_s5 + $0x2b0] sm:$0xff]   ;;  %v3085_v33 = vld [vmem:[%s3830_s5 + $0x2e8] sm:$0xff]  }
 0x126   : > { %v1614_v9 = vshll.u32 %v1530_v2, 16  ;;  %v1602_v14 = vrot.slane %v1600_v8, 1  ;;  %v1612_v21 = vshrl.u32 %v1530_v2, 16  ;;  %v1984_v26 = vrot.slane %v1911_v18, 1  ;;  %v3086_v35 = vld [vmem:[%s3830_s5 + $0x228] sm:$0xff]   ;;  %v3090_v40 = vld [vmem:[%s3830_s5 + $0x220] sm:$0xff]  }
 0x127   : > { %v1609_v49 = vrot.slane %v1607_v46, 1  ;;  %v1623_v51 = vrot.slane %v1621_v47, 1  ;;  %2807 = vmatpush3.bf16.msra.mxu0 %v3058_v42  ;;  %2829 = vmatpush3.bf16.msra.mxu1 %v3059_v43  ;;  %v1986_v29 = vrot.slane %v1913_v22, 1  ;;  %v3087_v36 = vld [vmem:[%s3830_s5 + $0x2a8] sm:$0xff]   ;;  %v3091_v41 = vld [vmem:[%s3830_s5 + $0x2a0] sm:$0xff]   ;;  %v3092_v42 = vld [vmem:[%s3830_s5 + $0x258] sm:$0xff]  }
 0x128   : > { %2808 = vmatprep.subr.bf16.mxu0 %v3060_v44  ;;  %2830 = vmatprep.subr.bf16.mxu1 %v3061_v45  ;;  %v1616_v15 = vrot.slane %v1614_v9, 1  ;;  %v1603_v23 = vor.u32 %v1602_v14, %v1598_v20  ;;  %v3093_v43 = vld [vmem:[%s3830_s5 + $0x2d8] sm:$0xff]   ;;  %v3096_v46 = vld [vmem:[%s3830_s5 + $0x250] sm:$0xff]   ;;  %v3106_v58 = vld [vmem:[%s3830_s5 + $0x200] sm:$0xff]  }
 0x129   : > { %v1610_v54 = vor.u32 %v1609_v49, %v1605_v48  ;;  %v1624_v55 = vor.u32 %v1623_v51, %v1619_v50  ;;  %v3094_v44 = vld [vmem:[%s3830_s5 + $0x218] sm:$0xff]   ;;  %v3097_v47 = vld [vmem:[%s3830_s5 + $0x2d0] sm:$0xff]   ;;  %v3100_v50 = vld [vmem:[%s3830_s5 + $0x248] sm:$0xff]  }
 0x12a   : > { %v1617_v24 = vor.u32 %v1616_v15, %v1612_v21  ;;  %v3095_v45 = vld [vmem:[%s3830_s5 + $0x298] sm:$0xff]   ;;  %v3098_v48 = vld [vmem:[%s3830_s5 + $0x210] sm:$0xff]   ;;  %v3101_v51 = vld [vmem:[%s3830_s5 + $0x2c8] sm:$0xff]  }
 0x12b   : > { %1853 = vmatprep.mubr.bf16.mxu0 %v1610_v54  ;;  %1893 = vmatprep.mubr.bf16.mxu1 %v1624_v55  ;;  %v3099_v49 = vld [vmem:[%s3830_s5 + $0x290] sm:$0xff]   ;;  %v3104_v54 = vld [vmem:[%s3830_s5 + $0x240] sm:$0xff]   ;;  %v1904_v62 = vld [vmem:[#allocation3 + $0x18] sm:$0xfc] }
 0x12c   : > { %2809 = vmatpush3.bf16.msra.mxu0 %v3062_v52  ;;  %2831 = vmatpush3.bf16.msra.mxu1 %v3063_v53  ;;  %v3102_v52 = vld [vmem:[%s3830_s5 + $0x208] sm:$0xff]   ;;  %v3105_v55 = vld [vmem:[%s3830_s5 + $0x2c0] sm:$0xff]  }
 0x12d   : > { %2810 = vmatprep.subr.bf16.mxu0 %v3064_v56  ;;  %2832 = vmatprep.subr.bf16.mxu1 %v3065_v57  ;;  %v3103_v53 = vld [vmem:[%s3830_s5 + $0x288] sm:$0xff]   ;;  %v1906_v56 = vld [vmem:[#allocation3 + $0x8] sm:$0x3]  ;;  %v1902_v59 = vld [vmem:[#allocation3 + $0x30] sm:$0xfc] }
 0x12e   : > { %v1908_v57 = vld [vmem:[#allocation3 + $0x28] sm:$0x3] }
 0x12f   : > { %v1912_v34 = vpack.c.bf16 %v1908_v57, %v1904_v62 }
 0x130   : > { %2811 = vmatpush3.bf16.msra.mxu0 %v3066_v60  ;;  %2833 = vmatpush3.bf16.msra.mxu1 %v3067_v61  ;;  %v3107_v60 = vld [vmem:[%s3830_s5 + $0x280] sm:$0xff]   ;;  %v1910_v61 = vpack.c.bf16 %v1906_v56, %v1902_v59 }
 0x131   : > { %2812 = vmatprep.subr.bf16.mxu0 %v3068_v63  ;;  %2834 = vmatprep.subr.bf16.mxu1 %v3069_v0  ;;  %v1985_v0 = vrot.slane %v1912_v34, 1 }
 0x132   : > { %v1983_v63 = vrot.slane %v1910_v61, 1 }
 0x134   : > { %2813 = vmatpush3.bf16.msra.mxu0 %v3070_v3  ;;  %2835 = vmatpush3.bf16.msra.mxu1 %v3071_v4 }
 0x135   : > { %2814 = vmatprep.subr.bf16.mxu0 %v3072_v5  ;;  %2836 = vmatprep.subr.bf16.mxu1 %v3073_v6 }
 0x138   : > { %2815 = vmatpush3.bf16.msra.mxu0 %v3074_v11  ;;  %2837 = vmatpush3.bf16.msra.mxu1 %v3075_v12 }
 0x139   : > { %2844 = vmatprep.subr.bf16.mxu0 %v3076_v38  ;;  %2866 = vmatprep.subr.bf16.mxu1 %v3077_v16 }
 0x13b   : > { %1854 = vmatmul.mubr.bf16.vlgmr.msra.gmra.mxu0 %v1603_v23  ;;  %1894 = vmatmul.mubr.bf16.vlgmr.msra.gmra.mxu1 %v1617_v24 }
 0x13c   : > { %2845 = vmatpush3.bf16.msra.mxu0 %v3078_v7  ;;  %2215 = vmatprep.mubr.bf16.mxu0 %v1984_v26  ;;  %v2527_v7 = vld [vmem:[%s3831_s6] ss:$0 sm:$0xff] }
 0x13d   : > { %2867 = vmatpush3.bf16.msra.mxu1 %v3079_v25  ;;  %2255 = vmatprep.mubr.bf16.mxu1 %v1986_v29 }
 0x13e   : > { %2846 = vmatprep.subr.bf16.mxu0 %v3080_v27  ;;  %2868 = vmatprep.subr.bf16.mxu1 %v3081_v28 }
 0x140   : > { %2847 = vmatpush3.bf16.msra.mxu0 %v3082_v30 }
 0x141   : > { %2869 = vmatpush3.bf16.msra.mxu1 %v3083_v31  ;;  %2848 = vmatprep.subr.bf16.mxu0 %v3084_v32 }
 0x142   : > { %2870 = vmatprep.subr.bf16.mxu1 %v3085_v33 }
 0x144   : > { %2849 = vmatpush3.bf16.msra.mxu0 %v3086_v35 }
 0x145   : > { %2871 = vmatpush3.bf16.msra.mxu1 %v3087_v36  ;;  %2850 = vmatprep.subr.bf16.mxu0 %v3088_v37  ;;  %v2268_v37 = vpop.permute.xlu0 %2267 }
 0x146   : > { %2872 = vmatprep.subr.bf16.mxu1 %v3089_v39 }
 0x148   : > { %2851 = vmatpush3.bf16.msra.mxu0 %v3090_v40 }
 0x149   : > { %2873 = vmatpush3.bf16.msra.mxu1 %v3091_v41  ;;  %2852 = vmatprep.subr.bf16.mxu0 %v3092_v42 }
 0x14a   : > { %2874 = vmatprep.subr.bf16.mxu1 %v3093_v43 }
 0x14c   : > { %2853 = vmatpush3.bf16.msra.mxu0 %v3094_v44 }
 0x14d   : > { %2875 = vmatpush3.bf16.msra.mxu1 %v3095_v45  ;;  %2854 = vmatprep.subr.bf16.mxu0 %v3096_v46 }
 0x14e   : > { %2876 = vmatprep.subr.bf16.mxu1 %v3097_v47 }
 0x150   : > { %2855 = vmatpush3.bf16.msra.mxu0 %v3098_v48 }
 0x151   : > { %2877 = vmatpush3.bf16.msra.mxu1 %v3099_v49  ;;  %2856 = vmatprep.subr.bf16.mxu0 %v3100_v50 }
 0x152   : > { %2878 = vmatprep.subr.bf16.mxu1 %v3101_v51 }
 0x154   : > { %2857 = vmatpush3.bf16.msra.mxu0 %v3102_v52 }
 0x155   : > { %2879 = vmatpush3.bf16.msra.mxu1 %v3103_v53  ;;  %2858 = vmatprep.subr.bf16.mxu0 %v3104_v54 }
 0x156   : > { %2880 = vmatprep.subr.bf16.mxu1 %v3105_v55 }
 0x158   : > { %2859 = vmatpush3.bf16.msra.mxu0 %v3106_v58 }
 0x159   : > { %2881 = vmatpush3.bf16.msra.mxu1 %v3107_v60 }
 0x15b   : > { %2216 = vmatmul.mubr.bf16.vlgmr.msra.gmra.mxu0 %v1983_v63 }
 0x15c   : > { %2256 = vmatmul.mubr.bf16.vlgmr.msra.gmra.mxu1 %v1985_v0 }
 0x1da   : > { %v2772_v1 = vpop.f32.mrf.mxu0  ;;  %v2794_v2 = vpop.f32.mrf.mxu1 }
 0x1dc   : > { %v2773_v3 = vpop.f32.mrf.mxu0  ;;  %v2795_v4 = vpop.f32.mrf.mxu1 }
 0x1dd   : > { %v2774_v5 = vadd.f32 %v2773_v3, %v2772_v1  ;;  %v2796_v6 = vadd.f32 %v2795_v4, %v2794_v2 }
 0x1de   : > { %v2775_v8 = vpop.f32.mrf.mxu0  ;;  %v2797_v9 = vpop.f32.mrf.mxu1 }
 0x1df   : > { %v1514_v10 = vadd.f32 %v2796_v6, %v2774_v5 }
 0x1e0   : > { %v2776_v11 = vpop.f32.mrf.mxu0  ;;  %v2798_v12 = vpop.f32.mrf.mxu1 }
 0x1e1   : > { %v1519_v28 = vadd.f32 %v2527_v7, %v1514_v10 }
 0x1fb   : > { %v2816_v13 = vpop.f32.mrf.mxu0  ;;  %v2838_v14 = vpop.f32.mrf.mxu1 }
 0x1fd   : > { %v2817_v15 = vpop.f32.mrf.mxu0  ;;  %v2839_v38 = vpop.f32.mrf.mxu1 }
 0x1fe   : > { %v2818_v20 = vadd.f32 %v2817_v15, %v2816_v13  ;;  %v2840_v21 = vadd.f32 %v2839_v38, %v2838_v14 }
 0x1ff   : > { %v2819_v16 = vpop.f32.mrf.mxu0  ;;  %v2841_v17 = vpop.f32.mrf.mxu1 }
 0x200   : > { %v1896_v24 = vadd.f32 %v2840_v21, %v2818_v20 }
 0x201   : > { %v2820_v18 = vpop.f32.mrf.mxu0  ;;  %v2842_v19 = vpop.f32.mrf.mxu1 }
 0x202   : > { %v1901_v35 = vadd.f32 %v1896_v24, %v1519_v28 }
 0x21b   : > { %v2860_v22 = vpop.f32.mrf.mxu0 }
 0x21c   : > { %v2882_v23 = vpop.f32.mrf.mxu1 }
 0x21d   : > { %v2861_v25 = vpop.f32.mrf.mxu0 }
 0x21e   : > { %v2862_v26 = vadd.f32 %v2861_v25, %v2860_v22  ;;  %v2883_v27 = vpop.f32.mrf.mxu1 }
 0x21f   : > { %v2884_v29 = vadd.f32 %v2883_v27, %v2882_v23  ;;  %v2863_v30 = vpop.f32.mrf.mxu0 }
 0x220   : > { %v2885_v31 = vpop.f32.mrf.mxu1 }
 0x221   : > { %v2258_v32 = vadd.f32 %v2884_v29, %v2862_v26  ;;  %v2864_v33 = vpop.f32.mrf.mxu0 }
 0x222   : > { %v2886_v36 = vpop.f32.mrf.mxu1 }
 0x223   : > { %v2263_v39 = vadd.f32 %v2258_v32, %v1901_v35 }
 0x225   : > { %v2270_v40 = vadd.f32 %v2268_v37, %v2263_v39 }
 0x227   : > { %2272 = vst.msk [vmem:[%s413_s11] sm:$0xff] %vm2271_vm11, %v2270_v40 }
 0x228 PF: > { %s17_s28 = sadd.s32 1, %s3158_s28   ;;  %s3842_s24 = smov %s3150_s26 }
 0x229   : > { %p14_p11 = scmp.ge.s32.totalorder %s17_s28, 6   ;;  %s3843_s25 = smov %s3154_s27 }
 0x22a   : > { %s3844_s26 = smov %s3847_s29  ;;  %s3845_s27 = smov %s3851_s30 }
 0x22b   :  { %16 = sbr.rel (!%p14_p11) target bundleno = 3 (0x3), region = 88 }

</bundles_post_ra>
